<compile_context>
chip_gen: v5e
topology: v5e:2x2
jax: 0.10.0
libtpu: 0.0.40
codegen_flags: <defaults>
</compile_context>

<pallas_src>
import functools

import jax
import jax.numpy as jnp
from jax.experimental import pallas as pl
from jax.experimental.pallas import tpu as pltpu


def _triplet_loss_kernel(a_ref, p_ref, n_ref, out_ref, acc_ref, *,
                         margin, batch, tile_b, ragged):
    i = pl.program_id(0)

    @pl.when(i == 0)
    def _():
        acc_ref[0] = jnp.float32(0.0)

    a = a_ref[...]
    p = p_ref[...]
    n = n_ref[...]
    if a.dtype != jnp.float32:  # only cast when the input is not already f32
        a = a.astype(jnp.float32)
        p = p.astype(jnp.float32)
        n = n.astype(jnp.float32)

    # Per-row L2 distances over the feature (lane) axis.
    dp = a - p
    dn = a - n
    dist_pos = jnp.sqrt(jnp.sum(dp * dp, axis=1, keepdims=True))  # (TB, 1)
    dist_neg = jnp.sqrt(jnp.sum(dn * dn, axis=1, keepdims=True))  # (TB, 1)

    # Hinge.
    losses = jnp.maximum(dist_pos - dist_neg + jnp.float32(margin), 0.0)

    # Mask rows of the ragged last tile that fall past the true B.  Only
    # emitted when the batch does not divide evenly into tiles.
    if ragged:
        row_ids = i * tile_b + jax.lax.broadcasted_iota(
            jnp.int32, losses.shape, 0)
        losses = jnp.where(row_ids < batch, losses, 0.0)

    # Accumulate the global partial sum in SMEM.
    acc_ref[0] += jnp.sum(losses)

    @pl.when(i == pl.num_programs(0) - 1)
    def _():
        # Divide by the true global batch size exactly once.
        out_ref[0, 0] = acc_ref[0] / batch


def _choose_tile_batch(B, D, itemsize):
    # 3 inputs x 2 pipeline buffers per grid step; keep the input working set
    # under ~24 MiB so it fits v7x's 64 MiB VMEM (and v5e/v6e trivially).
    budget = 24 * 1024 * 1024
    per_row = 3 * 2 * max(D, 128) * itemsize  # lanes pad to 128-wide vregs
    tb = budget // per_row
    return int(max(8, min(tb, B, 4096)))


def triplet_loss(anchor, positive, negative, margin=1.0, tile_batch=None):
    assert anchor.shape == positive.shape == negative.shape
    assert anchor.ndim == 2
    B, D = anchor.shape
    itemsize = jnp.dtype(anchor.dtype).itemsize

    # TODO(synk): for skinny D (<128) at very large B, a transposed (D, TB)
    # layout would fill all 128 lanes; kept (B, D) here to match the module.
    if tile_batch is None:
        tile_batch = _choose_tile_batch(B, D, itemsize)
    tb = min(int(tile_batch), B)
    if tb < B:
        tb = max(8, (tb // 8) * 8)  # sublane-aligned tile when not full extent
    num_tiles = pl.cdiv(B, tb)
    ragged = (B % tb) != 0

    # Explicit VMEM limit: 3 inputs x 2 buffers x padded tile + headroom,
    # clamped to stay comfortably inside v7x's 64 MiB physical VMEM.
    tile_bytes = 3 * 2 * tb * max(D, 128) * itemsize
    vmem_limit = int(min(56 * 1024 * 1024,
                         max(16 * 1024 * 1024, tile_bytes + 4 * 1024 * 1024)))

    kernel = functools.partial(
        _triplet_loss_kernel, margin=float(margin), batch=B, tile_b=tb,
        ragged=ragged)

    out = pl.pallas_call(
        kernel,
        out_shape=jax.ShapeDtypeStruct((1, 1), jnp.float32),
        grid_spec=pltpu.PrefetchScalarGridSpec(
            num_scalar_prefetch=0,
            grid=(num_tiles,),
            in_specs=[
                pl.BlockSpec((tb, D), lambda i: (i, 0)),
                pl.BlockSpec((tb, D), lambda i: (i, 0)),
                pl.BlockSpec((tb, D), lambda i: (i, 0)),
            ],
            out_specs=pl.BlockSpec(memory_space=pltpu.SMEM),
            scratch_shapes=[pltpu.SMEM((1,), jnp.float32)],
        ),
        compiler_params=pltpu.CompilerParams(
            dimension_semantics=("arbitrary",),  # sequential reduction axis
            vmem_limit_bytes=vmem_limit,
        ),
    )(anchor, positive, negative)
    return out[0, 0]


def _reference(anchor, positive, negative, margin=1.0):
    dp = jnp.linalg.norm(anchor - positive, axis=1)
    dn = jnp.linalg.norm(anchor - negative, axis=1)
    return jnp.mean(jnp.maximum(dp - dn + margin, 0.0))


if __name__ == "__main__":
    key = jax.random.PRNGKey(0)

    # Case 1: small embedding batch, single tile.
    k1, k2, k3, k4, k5, k6 = jax.random.split(key, 6)
    B, D = 8, 32
    anchor = jax.random.normal(k1, (B, D), dtype=jnp.float32)
    positive = jax.random.normal(k2, (B, D), dtype=jnp.float32)
    negative = jax.random.normal(k3, (B, D), dtype=jnp.float32)

    loss = triplet_loss(anchor, positive, negative, margin=1.0)
    jax.block_until_ready(loss)
    ref = _reference(anchor, positive, negative, margin=1.0)
    assert jnp.allclose(loss, ref, atol=1e-5, rtol=1e-5), (loss, ref)

    # Case 2: exercise the batch grid + ragged-last-tile masking (B=20, TB=8).
    B2, D2 = 20, 32
    a2 = jax.random.normal(k4, (B2, D2), dtype=jnp.float32)
    p2 = jax.random.normal(k5, (B2, D2), dtype=jnp.float32)
    n2 = jax.random.normal(k6, (B2, D2), dtype=jnp.float32)

    loss2 = triplet_loss(a2, p2, n2, margin=1.0, tile_batch=8)
    jax.block_until_ready(loss2)
    ref2 = _reference(a2, p2, n2, margin=1.0)
    assert jnp.allclose(loss2, ref2, atol=1e-5, rtol=1e-5), (loss2, ref2)

    # Case 3: evenly-divisible batch over multiple tiles (mask elided).
    B3, D3 = 32, 64
    a3 = jax.random.normal(k1, (B3, D3), dtype=jnp.float32)
    p3 = jax.random.normal(k2, (B3, D3), dtype=jnp.float32)
    n3 = jax.random.normal(k3, (B3, D3), dtype=jnp.float32)

    loss3 = triplet_loss(a3, p3, n3, margin=0.5, tile_batch=8)
    jax.block_until_ready(loss3)
    ref3 = _reference(a3, p3, n3, margin=0.5)
    assert jnp.allclose(loss3, ref3, atol=1e-5, rtol=1e-5), (loss3, ref3)

    print("KERNEL_OK")
</pallas_src>

<mosaic_0001>
module attributes {stable_mosaic.version = 11 : i64} {
  func.func @_triplet_loss_kernel(%arg0: i32, %arg1: memref<8x32xf32, #tpu.memory_space<vmem>>, %arg2: memref<8x32xf32, #tpu.memory_space<vmem>>, %arg3: memref<8x32xf32, #tpu.memory_space<vmem>>, %arg4: memref<1x1xf32, #tpu.memory_space<smem>>, %arg5: memref<1xf32, #tpu.memory_space<smem>>) attributes {dimension_semantics = [#tpu.dimension_semantics<arbitrary>], iteration_bounds = array<i64: 1>, scalar_prefetch = 0 : i64, scratch_operands = 1 : i64, tpu.core_type = #tpu.core_type<tc>, window_params = [{transform_indices = @transform_0, window_bounds = array<i64: 8, 32>}, {transform_indices = @transform_1, window_bounds = array<i64: 8, 32>}, {transform_indices = @transform_2, window_bounds = array<i64: 8, 32>}, {transform_indices = @transform_3, window_bounds = array<i64: 1, 1>}]} {
    %c0_i32 = arith.constant 0 : i32
    %0 = arith.cmpi eq, %arg0, %c0_i32 : i32
    %1 = arith.extui %0 : i1 to i32
    %c0_i32_0 = arith.constant 0 : i32
    %2 = arith.cmpi ne, %1, %c0_i32_0 : i32
    scf.if %2 {
      %cst_14 = arith.constant 0.000000e+00 : f32
      %c0_15 = arith.constant 0 : index
      %31 = memref.load %arg5[%c0_15] : memref<1xf32, #tpu.memory_space<smem>>
      memref.store %cst_14, %arg5[%c0_15] : memref<1xf32, #tpu.memory_space<smem>>
    } else {
    }
    %c0 = arith.constant 0 : index
    %c0_1 = arith.constant 0 : index
    %3 = vector.load %arg1[%c0, %c0_1] : memref<8x32xf32, #tpu.memory_space<vmem>>, vector<8x32xf32>
    %c0_2 = arith.constant 0 : index
    %c0_3 = arith.constant 0 : index
    %4 = vector.load %arg2[%c0_2, %c0_3] : memref<8x32xf32, #tpu.memory_space<vmem>>, vector<8x32xf32>
    %c0_4 = arith.constant 0 : index
    %c0_5 = arith.constant 0 : index
    %5 = vector.load %arg3[%c0_4, %c0_5] : memref<8x32xf32, #tpu.memory_space<vmem>>, vector<8x32xf32>
    %6 = arith.subf %3, %4 : vector<8x32xf32>
    %7 = arith.subf %3, %5 : vector<8x32xf32>
    %8 = arith.mulf %6, %6 : vector<8x32xf32>
    %cst = arith.constant dense<0.000000e+00> : vector<8xf32>
    %9 = vector.multi_reduction <add>, %8, %cst [1] : vector<8x32xf32> to vector<8xf32>
    %10 = vector.shape_cast %9 : vector<8xf32> to vector<8x1xf32>
    %11 = math.sqrt %10 : vector<8x1xf32>
    %12 = arith.mulf %7, %7 : vector<8x32xf32>
    %cst_6 = arith.constant dense<0.000000e+00> : vector<8xf32>
    %13 = vector.multi_reduction <add>, %12, %cst_6 [1] : vector<8x32xf32> to vector<8xf32>
    %14 = vector.shape_cast %13 : vector<8xf32> to vector<8x1xf32>
    %15 = math.sqrt %14 : vector<8x1xf32>
    %16 = arith.subf %11, %15 : vector<8x1xf32>
    %cst_7 = arith.constant 1.000000e+00 : f32
    %17 = vector.broadcast %cst_7 : f32 to vector<8x1xf32>
    %18 = arith.addf %16, %17 : vector<8x1xf32>
    %cst_8 = arith.constant 0.000000e+00 : f32
    %19 = vector.broadcast %cst_8 : f32 to vector<8x1xf32>
    %20 = arith.maximumf %18, %19 : vector<8x1xf32>
    %c0_9 = arith.constant 0 : index
    %21 = memref.load %arg5[%c0_9] : memref<1xf32, #tpu.memory_space<smem>>
    %22 = vector.shape_cast %20 : vector<8x1xf32> to vector<1x8x1xf32>
    %cst_10 = arith.constant dense<0.000000e+00> : vector<1xf32>
    %23 = vector.multi_reduction <add>, %22, %cst_10 [1, 2] : vector<1x8x1xf32> to vector<1xf32>
    %24 = vector.shape_cast %23 : vector<1xf32> to vector<1x1x1xf32>
    %25 = vector.extract %24[0, 0, 0] : f32 from vector<1x1x1xf32>
    %26 = arith.addf %21, %25 : f32
    %c0_11 = arith.constant 0 : index
    %27 = memref.load %arg5[%c0_11] : memref<1xf32, #tpu.memory_space<smem>>
    memref.store %26, %arg5[%c0_11] : memref<1xf32, #tpu.memory_space<smem>>
    %c0_i32_12 = arith.constant 0 : i32
    %28 = arith.cmpi eq, %arg0, %c0_i32_12 : i32
    %29 = arith.extui %28 : i1 to i32
    %c0_i32_13 = arith.constant 0 : i32
    %30 = arith.cmpi ne, %29, %c0_i32_13 : i32
    scf.if %30 {
      %c0_14 = arith.constant 0 : index
      %31 = memref.load %arg5[%c0_14] : memref<1xf32, #tpu.memory_space<smem>>
      %cst_15 = arith.constant 8.000000e+00 : f32
      %32 = arith.divf %31, %cst_15 : f32
      %c0_16 = arith.constant 0 : index
      %c0_17 = arith.constant 0 : index
      %33 = memref.load %arg4[%c0_16, %c0_17] : memref<1x1xf32, #tpu.memory_space<smem>>
      memref.store %32, %arg4[%c0_16, %c0_17] : memref<1x1xf32, #tpu.memory_space<smem>>
    } else {
    }
    return
  }
  func.func @transform_0(%arg0: i32) -> (i32, i32) {
    %c0_i32 = arith.constant 0 : i32
    %c0_i32_0 = arith.constant 0 : i32
    return %arg0, %c0_i32 : i32, i32
  }
  func.func @transform_1(%arg0: i32) -> (i32, i32) {
    %c0_i32 = arith.constant 0 : i32
    %c0_i32_0 = arith.constant 0 : i32
    return %arg0, %c0_i32 : i32, i32
  }
  func.func @transform_2(%arg0: i32) -> (i32, i32) {
    %c0_i32 = arith.constant 0 : i32
    %c0_i32_0 = arith.constant 0 : i32
    return %arg0, %c0_i32 : i32, i32
  }
  func.func @transform_3(%arg0: i32) -> (i32, i32) {
    %c0_i32 = arith.constant 0 : i32
    %c0_i32_0 = arith.constant 0 : i32
    %c0_i32_1 = arith.constant 0 : i32
    return %c0_i32, %c0_i32_0 : i32, i32
  }
}

</mosaic_0001>

<bundles_post_ra>
// kernel: tpu_custom_call.1
= control target key start
LH: loop header
LB: loop body
LE: loop exit
PB: predicated region body
PF: predicated region fallthrough
CT: control target
= control target key end

     0   :  { %8 = vsyncpa [#allocation4], 0  ;;  %s292_s0 = inlined_call_operand.hbm [shape: f32[8,32], index: 0, kind: input, shape index: {}]   ;;  %s293_s1 = inlined_call_operand.hbm [shape: f32[8,32], index: 1, kind: input, shape index: {}]   ;;  %s294_s2 = inlined_call_operand.hbm [shape: f32[8,32], index: 2, kind: input, shape index: {}]   ;;  %s295_s3 = inlined_call_operand.hbm [shape: f32[1,1], index: 3, kind: output, shape index: {}]  }
   0x1   :  { %9 = vsyncpa [#allocation7], 0  ;;  %s27_s14 = sshll.u32 %s293_s1, 4  ;;  %s28_s14 = int_to_ptr.hbm [resolvable:$true] %s27_s14 }
   0x2   :  { %10 = vsyncpa [#allocation5], 0  ;;  %s255_s15 = smov [#allocation6]   ;;  %s16_s19 = sshll.u32 %s292_s0, 4  ;;  %s17_s19 = int_to_ptr.hbm [resolvable:$true] %s16_s19 }
   0x3   :  { %s29_s16 = sshll.u32 %s255_s15, 4  ;;  %s256_s20 = smov [#allocation3]   ;;  %s30_s16 = int_to_ptr.vmem [resolvable:$true] %s29_s16 }
   0x4   :  { %32 = dma.hbm_to_vmem [thread:$0]  %s28_s14, 128, %s30_s16, [#allocation7]  }
   0x5   :  { %s18_s21 = sshll.u32 %s256_s20, 4  ;;  %s38_s24 = sshll.u32 %s294_s2, 4  ;;  %s19_s21 = int_to_ptr.vmem [resolvable:$true] %s18_s21  ;;  %s39_s24 = int_to_ptr.hbm [resolvable:$true] %s38_s24 }
   0x6   :  { %21 = dma.hbm_to_vmem [thread:$0]  %s17_s19, 128, %s19_s21, [#allocation4]  }
   0x7   :  { %s257_s1 = smov [#allocation8]  }
   0x8   :  { %s40_s25 = sshll.u32 %s257_s1, 4  ;;  %s41_s25 = int_to_ptr.vmem [resolvable:$true] %s40_s25 }
   0x9   :  { %43 = dma.hbm_to_vmem [thread:$0]  %s39_s24, 128, %s41_s25, [#allocation7]  }
   0xa   :  { %249 = dma.done.wait [#allocation4], 128  }
   0xb   :  { %250 = vsyncadd [#allocation4], 4294967168 }
   0xc   :  { %251 = dma.done.wait [#allocation7], 256  }
   0xd   :  { %252 = vsyncadd [#allocation7], 4294967040  ;;  %v62_v0 = vld [vmem:[#allocation3] sm:$0xff]  ;;  %v63_v1 = vld [vmem:[#allocation6] sm:$0xff]  ;;  %vm68_vm0 = vcmask 261120   ;;  %vm104_vm5 = vcmask 7168  }
   0xe   :  { %v64_v2 = vld [vmem:[#allocation8] sm:$0xff]  ;;  %v65_v3 = vsub.f32 %v62_v0, %v63_v1  ;;  %v258_v35 = vmov 8.0   ;;  %s138_s26 = sshll.u32 %s295_s3, 4  ;;  %s259_s30 = smov [#allocation9]   ;;  %s139_s26 = int_to_ptr.hbm [resolvable:$true] %s138_s26 }
   0xf   :  { %v66_v5 = vsub.f32 %v62_v0, %v64_v2 }
  0x10   :  { %v67_v4 = vmul.f32 %v65_v3, %v65_v3 }
  0x11   :  { %v84_v7 = vmul.f32 %v66_v5, %v66_v5 }
  0x12   :  { %v69_v6 = vsel %vm68_vm0, %v67_v4, 0.0 }
  0x13   :  { %70 = vadd.xlane.f32.xlu0 %v69_v6  ;;  %v85_v8 = vsel %vm68_vm0, %v84_v7, 0.0 }
  0x1b   :  { %86 = vadd.xlane.f32.xlu0 %v85_v8 }
  0x86   :  { %v71_v9 = vpop.xlane.xlu0 %70 }
  0x87   :  { %159 = vrsqrt.f32 %v71_v9  ;;  %vm79_vm1 = vcmp.eq.f32.partialorder %v71_v9, inf  ;;  %v82_v26 = vand.u32 2147483648, %v71_v9  ;;  %vm81_vm3 = vcmp.eq.f32.partialorder %v71_v9, 0.0 }
  0x8d   :  { %v160_v10 = vpop.eup %159 }
  0x8e   :  { %v73_v11 = vmul.f32 %v160_v10, %v71_v9  ;;  %v87_v12 = vpop.xlane.xlu0 %86 }
  0x8f   :  { %161 = vrsqrt.f32 %v87_v12  ;;  %vm95_vm2 = vcmp.eq.f32.partialorder %v87_v12, inf  ;;  %v98_v27 = vand.u32 2147483648, %v87_v12  ;;  %vm97_vm4 = vcmp.eq.f32.partialorder %v87_v12, 0.0 }
  0x90   :  { %v74_v13 = vmul.f32 %v160_v10, %v73_v11  ;;  %163 = vrcp.f32 %v258_v35 }
  0x92   :  { %v75_v14 = vmul.f32 0.5, %v74_v13 }
  0x94   :  { %v76_v15 = vsub.f32 1.5, %v75_v14 }
  0x95   :  { %v162_v16 = vpop.eup %161 }
  0x96   :  { %v89_v17 = vmul.f32 %v162_v16, %v87_v12  ;;  %v77_v19 = vmul.f32 %v160_v10, %v76_v15  ;;  %v164_v36 = vpop.eup %163 }
  0x97   :  { %v123_v37 = vmul.f32 8.0, %v164_v36  ;;  %vm127_vm6 = vweird.f32 %v164_v36 }
  0x98   :  { %v90_v18 = vmul.f32 %v162_v16, %v89_v17  ;;  %v78_v21 = vmul.f32 %v77_v19, %v71_v9 }
  0x99   :  { %v124_v38 = vsub.f32 1.0, %v123_v37 }
  0x9a   :  { %v91_v20 = vmul.f32 0.5, %v90_v18  ;;  %v80_v24 = vsel %vm79_vm1, %v71_v9, %v78_v21 }
  0x9b   :  { %v83_v29 = vsel %vm81_vm3, %v82_v26, %v80_v24  ;;  %v125_v42 = vmul.f32 %v164_v36, %v124_v38 }
  0x9c   :  { %v92_v22 = vsub.f32 1.5, %v91_v20 }
  0x9d   :  { %v126_v45 = vadd.f32 %v164_v36, %v125_v42 }
  0x9e   :  { %v93_v23 = vmul.f32 %v162_v16, %v92_v22 }
  0x9f   :  { %v128_v48 = vsel %vm127_vm6, %v164_v36, %v126_v45 }
  0xa0   :  { %v94_v25 = vmul.f32 %v93_v23, %v87_v12 }
  0xa2   :  { %v96_v28 = vsel %vm95_vm2, %v87_v12, %v94_v25 }
  0xa3   :  { %v99_v30 = vsel %vm97_vm4, %v98_v27, %v96_v28 }
  0xa4   :  { %v100_v31 = vsub.f32 %v83_v29, %v99_v30 }
  0xa6   :  { %v101_v32 = vadd.f32 1.0, %v100_v31 }
  0xa8   :  { %v102_v33 = vmax.f32 %v101_v32, 0.0 }
  0xaa   :  { %v105_v34 = vsel %vm104_vm5, %v102_v33, 0.0 }
  0xab   :  { %106 = vadd.xlane.f32.xlu1 %v105_v34 }
 0x11e   :  { %v107_v39 = vpop.xlane.xlu1 %106 }
 0x11f   :  { %v108_v40 = vrot.slane %v107_v39, 4 }
 0x121   :  { %v109_v41 = vadd.f32 %v108_v40, %v107_v39 }
 0x123   :  { %v110_v43 = vrot.slane %v109_v41, 2 }
 0x125   :  { %v111_v44 = vadd.f32 %v110_v43, %v109_v41 }
 0x127   :  { %v112_v46 = vrot.slane %v111_v44, 1 }
 0x129   :  { %v113_v47 = vadd.f32 %v112_v46, %v111_v44 }
 0x12b   :  { %150 = vpush %v113_v47 }
 0x12c   :  { %152 = vpush %v128_v48 }
 0x15c   :  { %s151_s27 = spop %150 }
 0x15d   :  { %s153_s28 = spop %152 }
 0x15e   :  { %s130_s29 = smul.f32 %s153_s28, %s151_s27 }
 0x160   :  { %132 = sst [smem:[#allocation9]] %s130_s29 }
 0x161   :  { %141 = dma.smem_to_hbm %s259_s30, 16, %s139_s26, [#allocation5]  }
 0x162   :  { %253 = dma.done.wait [#allocation5], 16  }
 0x163   :  { %254 = vsyncadd [#allocation5], 4294967280 }
 0x164   :  { %146 = sfence }
 0x165   :  { %147 = vsyncpa [#allocation4], 1 }
 0x166   :  { %148 = vsyncpa [#allocation7], 1 }
 0x167   :  { %149 = vsyncpa [#allocation5], 1 }

</bundles_post_ra>
